<compile_context>
chip_gen: v7x
topology: tpu7x:2x2x1
jax: 0.10.0
libtpu: 0.0.40
codegen_flags: <defaults>
</compile_context>

<pallas_src>
import math

import jax
import jax.numpy as jnp
from jax.experimental import pallas as pl
from jax.experimental.pallas import tpu as pltpu


def mlp_kernel(x_ref, w1_ref, b1_ref, a1_ref,
               w2_ref, b2_ref, a2_ref,
               w3_ref, b3_ref, o_ref):
    """One batch tile. x/W refs are bf16 (MXU operands), biases f32 in VMEM,
    PReLU alphas are f32 scalars in SMEM. All last dims are multiples of 128."""
    a1 = a1_ref[0]
    a2 = a2_ref[0]

    # Layer 1: Linear + PReLU  (bf16 MXU matmul, f32 accumulate / f32 VPU epilogue)
    h = jnp.dot(x_ref[...], w1_ref[...], preferred_element_type=jnp.float32)
    h = h + b1_ref[...]
    h = jnp.where(h > 0, h, a1 * h)

    # Dropout(p=0.0) -> identity.
    # Layer 2 (hidden): Linear + PReLU
    h = jnp.dot(h.astype(jnp.bfloat16), w2_ref[...],
                preferred_element_type=jnp.float32)
    h = h + b2_ref[...]
    h = jnp.where(h > 0, h, a2 * h)

    # Output layer: Linear
    y = jnp.dot(h.astype(jnp.bfloat16), w3_ref[...],
                preferred_element_type=jnp.float32)
    o_ref[...] = (y + b3_ref[...]).astype(o_ref.dtype)


def _round_up(x, m):
    return ((x + m - 1) // m) * m


def _block_diag(w, g):
    """Block-diagonal tiling of w (in, out) -> (g*in, g*out)."""
    fi, fo = w.shape
    out = jnp.zeros((g * fi, g * fo), w.dtype)
    for k in range(g):
        out = out.at[k * fi:(k + 1) * fi, k * fo:(k + 1) * fo].set(w)
    return out


def mlp_forward(x, params, *, block_rows=256):
    """x: (B, input_dim) f32. Returns (B, output_dim) f32.
    block_rows = grouped rows per grid step (1 grouped row = G batch rows)."""
    (w1, b1, a1, w2, b2, a2, w3, b3) = params  # weights already (in, out) layout
    B, in_dim = x.shape
    lat = w1.shape[1]
    out_dim = w3.shape[1]

    # Row-group factor: fold G batch rows into one grouped row so the kernel's
    # output lane width is out_dim*G = 128 (lane-dense, unmasked stores). The
    # block-diagonal weights keep per-row math identical.
    G = min(128 // math.gcd(128, out_dim), 16)

    # bf16 MXU operands (halves x HBM traffic); biases / PReLU stay f32.
    w1g = _block_diag(w1, G).astype(jnp.bfloat16)
    w2g = _block_diag(w2, G).astype(jnp.bfloat16)
    w3g = _block_diag(w3, G).astype(jnp.bfloat16)
    b1g = jnp.tile(b1, (1, G)).astype(jnp.float32)
    b2g = jnp.tile(b2, (1, G)).astype(jnp.float32)
    b3g = jnp.tile(b3, (1, G)).astype(jnp.float32)
    a1s = a1.reshape((1,)).astype(jnp.float32)
    a2s = a2.reshape((1,)).astype(jnp.float32)

    # Pad the batch so it folds into grouped rows that tile the grid evenly,
    # then fold: (B, in) -> (rows_p, G*in). Reshapes of contiguous HBM arrays
    # are free; padded rows are sliced off at the end.
    rows = -(-B // G)
    tile = _round_up(max(8, min(block_rows, rows)), 8)
    rows_p = _round_up(rows, tile)
    xg = (jnp.zeros((rows_p * G, in_dim), jnp.bfloat16)
          .at[:B].set(x.astype(jnp.bfloat16))
          .reshape(rows_p, G * in_dim))

    grid = (rows_p // tile,)
    const = lambda i: (0, 0)  # weights/biases: resident across grid steps
    smem = pl.BlockSpec(memory_space=pltpu.MemorySpace.SMEM)

    yg = pl.pallas_call(
        mlp_kernel,
        out_shape=jax.ShapeDtypeStruct((rows_p, G * out_dim), jnp.float32),
        grid=grid,
        in_specs=[
            pl.BlockSpec((tile, G * in_dim), lambda i: (i, 0)),   # x tile (streamed)
            pl.BlockSpec((G * in_dim, G * lat), const),           # W1 (resident)
            pl.BlockSpec((1, G * lat), const),                    # b1
            smem,                                                 # PReLU alpha1
            pl.BlockSpec((G * lat, G * lat), const),              # W2
            pl.BlockSpec((1, G * lat), const),                    # b2
            smem,                                                 # PReLU alpha2
            pl.BlockSpec((G * lat, G * out_dim), const),          # W3
            pl.BlockSpec((1, G * out_dim), const),                # b3
        ],
        out_specs=pl.BlockSpec((tile, G * out_dim), lambda i: (i, 0)),
        compiler_params=pltpu.CompilerParams(
            # batch axis is independent -> shard across v7x's 2 TensorCores.
            dimension_semantics=("parallel",)),
    )(xg, w1g, b1g, a1s, w2g, b2g, a2s, w3g, b3g)

    # Unfold grouped rows and drop batch padding (free metadata ops).
    return yg.reshape(rows_p * G, out_dim)[:B]


def init_params(key, input_dim, latent_dim, output_dim):
    """Mimics nn.Linear uniform(-1/sqrt(fan_in), 1/sqrt(fan_in)) init.
    Weights stored as (in_features, out_features)."""
    ks = jax.random.split(key, 6)

    def lin(kw, kb, fan_in, fan_out):
        bound = 1.0 / math.sqrt(fan_in)
        w = jax.random.uniform(kw, (fan_in, fan_out), jnp.float32, -bound, bound)
        b = jax.random.uniform(kb, (1, fan_out), jnp.float32, -bound, bound)
        return w, b

    w1, b1 = lin(ks[0], ks[1], input_dim, latent_dim)
    w2, b2 = lin(ks[2], ks[3], latent_dim, latent_dim)
    w3, b3 = lin(ks[4], ks[5], latent_dim, output_dim)
    a1 = jnp.full((1,), 0.25, jnp.float32)  # nn.PReLU default single parameter
    a2 = jnp.full((1,), 0.25, jnp.float32)
    return (w1, b1, a1, w2, b2, a2, w3, b3)


def mlp_reference(x, params, *, mimic_bf16=False):
    """Pure-JAX reference. mimic_bf16=True applies the same bf16 quantization
    points as the kernel (but f32 math), for a tight numerical check."""
    (w1, b1, a1, w2, b2, a2, w3, b3) = params
    c = ((lambda v: v.astype(jnp.bfloat16).astype(jnp.float32))
         if mimic_bf16 else (lambda v: v))
    dot = lambda a, b: jnp.dot(a, b, precision=jax.lax.Precision.HIGHEST)
    h = dot(c(x), c(w1)) + b1
    h = jnp.where(h > 0, h, a1 * h)
    h = dot(c(h), c(w2)) + b2
    h = jnp.where(h > 0, h, a2 * h)
    return dot(c(h), c(w3)) + b3


if __name__ == "__main__":
    # Module config (PyTorch defaults): n_hidden=1, latent_dim=32,
    # dropout=0.0 (identity), batch_norm=False.
    input_dim, output_dim, latent_dim = 16, 8, 32
    batch = 600  # not a multiple of 16: exercises the padding path

    key = jax.random.PRNGKey(0)
    kx, kp = jax.random.split(key)
    x = jax.random.normal(kx, (batch, input_dim), jnp.float32)
    params = init_params(kp, input_dim, latent_dim, output_dim)

    # Small block_rows so the demo exercises a multi-step grid (3 steps);
    # production default block_rows=256 grouped rows (= 4096 batch rows/step).
    forward = jax.jit(lambda xx, pp: mlp_forward(xx, pp, block_rows=16))
    y = jax.block_until_ready(forward(x, params))

    assert y.shape == (batch, output_dim)

    # Tight check: identical bf16 quantization points, f32 math -> only MXU
    # accumulation-order differences remain.
    y_bf = mlp_reference(x, params, mimic_bf16=True)
    assert jnp.allclose(y, y_bf, atol=1e-3, rtol=1e-3), "mismatch vs bf16-matched reference"
    # Loose check against the pure-f32 module semantics (bf16 operand rounding).
    y_f32 = mlp_reference(x, params, mimic_bf16=False)
    assert jnp.allclose(y, y_f32, atol=5e-2, rtol=5e-2), "mismatch vs f32 reference"

    print("KERNEL_OK")
</pallas_src>

<mosaic_0001>
module attributes {stable_mosaic.version = 11 : i64} {
  func.func @mlp_kernel(%arg0: i32, %arg1: memref<16x256xbf16, #tpu.memory_space<vmem>>, %arg2: memref<256x512xbf16, #tpu.memory_space<vmem>>, %arg3: memref<1x512xf32, #tpu.memory_space<vmem>>, %arg4: memref<1xf32, #tpu.memory_space<smem>>, %arg5: memref<512x512xbf16, #tpu.memory_space<vmem>>, %arg6: memref<1x512xf32, #tpu.memory_space<vmem>>, %arg7: memref<1xf32, #tpu.memory_space<smem>>, %arg8: memref<512x128xbf16, #tpu.memory_space<vmem>>, %arg9: memref<1x128xf32, #tpu.memory_space<vmem>>, %arg10: memref<16x128xf32, #tpu.memory_space<vmem>>) attributes {dimension_semantics = [#tpu.dimension_semantics<parallel>], iteration_bounds = array<i64: 3>, scalar_prefetch = 0 : i64, scratch_operands = 0 : i64, tpu.core_type = #tpu.core_type<tc>, window_params = [{transform_indices = @transform_0, window_bounds = array<i64: 16, 256>}, {pipeline_mode = #tpu.pipeline_mode<synchronous>, transform_indices = @transform_1, window_bounds = array<i64: 256, 512>}, {pipeline_mode = #tpu.pipeline_mode<synchronous>, transform_indices = @transform_2, window_bounds = array<i64: 1, 512>}, {transform_indices = @transform_3, window_bounds = array<i64: 1>}, {pipeline_mode = #tpu.pipeline_mode<synchronous>, transform_indices = @transform_4, window_bounds = array<i64: 512, 512>}, {pipeline_mode = #tpu.pipeline_mode<synchronous>, transform_indices = @transform_5, window_bounds = array<i64: 1, 512>}, {transform_indices = @transform_6, window_bounds = array<i64: 1>}, {pipeline_mode = #tpu.pipeline_mode<synchronous>, transform_indices = @transform_7, window_bounds = array<i64: 512, 128>}, {pipeline_mode = #tpu.pipeline_mode<synchronous>, transform_indices = @transform_8, window_bounds = array<i64: 1, 128>}, {transform_indices = @transform_9, window_bounds = array<i64: 16, 128>}]} {
    %c0 = arith.constant 0 : index
    %0 = memref.load %arg4[%c0] : memref<1xf32, #tpu.memory_space<smem>>
    %c0_0 = arith.constant 0 : index
    %1 = memref.load %arg7[%c0_0] : memref<1xf32, #tpu.memory_space<smem>>
    %c0_1 = arith.constant 0 : index
    %c0_2 = arith.constant 0 : index
    %2 = vector.load %arg1[%c0_1, %c0_2] : memref<16x256xbf16, #tpu.memory_space<vmem>>, vector<16x256xbf16>
    %c0_3 = arith.constant 0 : index
    %c0_4 = arith.constant 0 : index
    %3 = vector.load %arg2[%c0_3, %c0_4] : memref<256x512xbf16, #tpu.memory_space<vmem>>, vector<256x512xbf16>
    %cst = arith.constant dense<0.000000e+00> : vector<16x512xf32>
    %4 = tpu.matmul %2, %3, %cst {dimension_numbers = #tpu.dot_dimension_numbers<[1], [0], [0], [1], [0, 0, 1, 1], [], []>} : vector<16x256xbf16>, vector<256x512xbf16>, vector<16x512xf32> -> vector<16x512xf32>
    %c0_5 = arith.constant 0 : index
    %c0_6 = arith.constant 0 : index
    %5 = vector.load %arg3[%c0_5, %c0_6] : memref<1x512xf32, #tpu.memory_space<vmem>>, vector<1x512xf32>
    %6 = vector.broadcast %5 : vector<1x512xf32> to vector<16x512xf32>
    %7 = arith.addf %4, %6 : vector<16x512xf32>
    %cst_7 = arith.constant 0.000000e+00 : f32
    %8 = vector.broadcast %cst_7 : f32 to vector<16x512xf32>
    %9 = arith.cmpf ogt, %7, %8 : vector<16x512xf32>
    %10 = vector.broadcast %0 : f32 to vector<16x512xf32>
    %11 = arith.mulf %10, %7 : vector<16x512xf32>
    %12 = arith.select %9, %7, %11 : vector<16x512xi1>, vector<16x512xf32>
    %13 = arith.truncf %12 : vector<16x512xf32> to vector<16x512xbf16>
    %c0_8 = arith.constant 0 : index
    %c0_9 = arith.constant 0 : index
    %14 = vector.load %arg5[%c0_8, %c0_9] : memref<512x512xbf16, #tpu.memory_space<vmem>>, vector<512x512xbf16>
    %cst_10 = arith.constant dense<0.000000e+00> : vector<16x512xf32>
    %15 = tpu.matmul %13, %14, %cst_10 {dimension_numbers = #tpu.dot_dimension_numbers<[1], [0], [0], [1], [0, 0, 1, 1], [], []>} : vector<16x512xbf16>, vector<512x512xbf16>, vector<16x512xf32> -> vector<16x512xf32>
    %c0_11 = arith.constant 0 : index
    %c0_12 = arith.constant 0 : index
    %16 = vector.load %arg6[%c0_11, %c0_12] : memref<1x512xf32, #tpu.memory_space<vmem>>, vector<1x512xf32>
    %17 = vector.broadcast %16 : vector<1x512xf32> to vector<16x512xf32>
    %18 = arith.addf %15, %17 : vector<16x512xf32>
    %cst_13 = arith.constant 0.000000e+00 : f32
    %19 = vector.broadcast %cst_13 : f32 to vector<16x512xf32>
    %20 = arith.cmpf ogt, %18, %19 : vector<16x512xf32>
    %21 = vector.broadcast %1 : f32 to vector<16x512xf32>
    %22 = arith.mulf %21, %18 : vector<16x512xf32>
    %23 = arith.select %20, %18, %22 : vector<16x512xi1>, vector<16x512xf32>
    %24 = arith.truncf %23 : vector<16x512xf32> to vector<16x512xbf16>
    %c0_14 = arith.constant 0 : index
    %c0_15 = arith.constant 0 : index
    %25 = vector.load %arg8[%c0_14, %c0_15] : memref<512x128xbf16, #tpu.memory_space<vmem>>, vector<512x128xbf16>
    %cst_16 = arith.constant dense<0.000000e+00> : vector<16x128xf32>
    %26 = tpu.matmul %24, %25, %cst_16 {dimension_numbers = #tpu.dot_dimension_numbers<[1], [0], [0], [1], [0, 0, 1, 1], [], []>} : vector<16x512xbf16>, vector<512x128xbf16>, vector<16x128xf32> -> vector<16x128xf32>
    %c0_17 = arith.constant 0 : index
    %c0_18 = arith.constant 0 : index
    %27 = vector.load %arg9[%c0_17, %c0_18] : memref<1x128xf32, #tpu.memory_space<vmem>>, vector<1x128xf32>
    %28 = vector.broadcast %27 : vector<1x128xf32> to vector<16x128xf32>
    %29 = arith.addf %26, %28 : vector<16x128xf32>
    %c0_19 = arith.constant 0 : index
    %c0_20 = arith.constant 0 : index
    %30 = vector.load %arg10[%c0_19, %c0_20] : memref<16x128xf32, #tpu.memory_space<vmem>>, vector<16x128xf32>
    tpu.vector_store %arg10[%c0_19, %c0_20], %29 {strides = array<i32>} : memref<16x128xf32, #tpu.memory_space<vmem>>, vector<16x128xf32>,
    return
  }
  func.func @transform_0(%arg0: i32) -> (i32, i32) {
    %c0_i32 = arith.constant 0 : i32
    %c0_i32_0 = arith.constant 0 : i32
    return %arg0, %c0_i32 : i32, i32
  }
  func.func @transform_1(%arg0: i32) -> (i32, i32) {
    %c0_i32 = arith.constant 0 : i32
    %c0_i32_0 = arith.constant 0 : i32
    %c0_i32_1 = arith.constant 0 : i32
    return %c0_i32, %c0_i32_0 : i32, i32
  }
  func.func @transform_2(%arg0: i32) -> (i32, i32) {
    %c0_i32 = arith.constant 0 : i32
    %c0_i32_0 = arith.constant 0 : i32
    %c0_i32_1 = arith.constant 0 : i32
    return %c0_i32, %c0_i32_0 : i32, i32
  }
  func.func @transform_3(%arg0: i32) -> i32 {
    %c0_i32 = arith.constant 0 : i32
    %c0_i32_0 = arith.constant 0 : i32
    return %c0_i32 : i32
  }
  func.func @transform_4(%arg0: i32) -> (i32, i32) {
    %c0_i32 = arith.constant 0 : i32
    %c0_i32_0 = arith.constant 0 : i32
    %c0_i32_1 = arith.constant 0 : i32
    return %c0_i32, %c0_i32_0 : i32, i32
  }
  func.func @transform_5(%arg0: i32) -> (i32, i32) {
    %c0_i32 = arith.constant 0 : i32
    %c0_i32_0 = arith.constant 0 : i32
    %c0_i32_1 = arith.constant 0 : i32
    return %c0_i32, %c0_i32_0 : i32, i32
  }
  func.func @transform_6(%arg0: i32) -> i32 {
    %c0_i32 = arith.constant 0 : i32
    %c0_i32_0 = arith.constant 0 : i32
    return %c0_i32 : i32
  }
  func.func @transform_7(%arg0: i32) -> (i32, i32) {
    %c0_i32 = arith.constant 0 : i32
    %c0_i32_0 = arith.constant 0 : i32
    %c0_i32_1 = arith.constant 0 : i32
    return %c0_i32, %c0_i32_0 : i32, i32
  }
  func.func @transform_8(%arg0: i32) -> (i32, i32) {
    %c0_i32 = arith.constant 0 : i32
    %c0_i32_0 = arith.constant 0 : i32
    %c0_i32_1 = arith.constant 0 : i32
    return %c0_i32, %c0_i32_0 : i32, i32
  }
  func.func @transform_9(%arg0: i32) -> (i32, i32) {
    %c0_i32 = arith.constant 0 : i32
    %c0_i32_0 = arith.constant 0 : i32
    return %arg0, %c0_i32 : i32, i32
  }
}

</mosaic_0001>

<bundles_post_ra>
// kernel: _lambda_.1
= control target key start
LH: loop header
LB: loop body
LE: loop exit
PB: predicated region body
PF: predicated region fallthrough
CT: control target
= control target key end

     0   :  { %s2966_s13 = smov 0   ;;  %s3714_s0 = inlined_call_operand.vmem [shape: bf16[48,256], index: 0, kind: input, shape index: {}]   ;;  %s3715_s1 = inlined_call_operand.vmem [shape: bf16[256,512], index: 1, kind: input, shape index: {}]   ;;  %s3716_s2 = inlined_call_operand.vmem [shape: f32[1,512], index: 2, kind: input, shape index: {}]   ;;  %s3717_s3 = inlined_call_operand.<no memory space> [shape: f32[1], index: 3, kind: input, shape index: {}]   ;;  %s3718_s4 = inlined_call_operand.vmem [shape: bf16[512,512], index: 4, kind: input, shape index: {}]   ;;  %s3719_s5 = inlined_call_operand.vmem [shape: f32[1,512], index: 5, kind: input, shape index: {}]   ;;  %s3720_s6 = inlined_call_operand.<no memory space> [shape: f32[1], index: 6, kind: input, shape index: {}]   ;;  %s3721_s7 = inlined_call_operand.vmem [shape: bf16[512,128], index: 7, kind: input, shape index: {}]   ;;  %s3722_s8 = inlined_call_operand.vmem [shape: f32[1,128], index: 8, kind: input, shape index: {}]   ;;  %s3723_s9 = inlined_call_operand.vmem [shape: f32[48,128], index: 9, kind: output, shape index: {}]  }
   0x1   :  { %14 = sst [smem:[#allocation2]] %s3717_s3 }
   0x2   :  { %15 = sst [smem:[#allocation3]] %s3720_s6 }
   0x3 LB: > { %s2271_s14 = sadd.s32 4294967295, %s2908_s13   ;;  %p2275_p0 = scmp.ge.s32.totalorder %s2908_s13, 1  ;;  %s2908_s13 = sphi %s2966_s13, %s21_s13  }
   0x4   : > { %p291_p1 = scmp.lt.s32.totalorder %s2908_s13, 4 }
   0x6   : > { %p292_p2 = pnand %p2275_p0, %p291_p1 }
   0x7   : > { %v2579_v0 = vld [vmem:[%s3715_s1 + $0x4] ss:$16 sps:$4 sm:$0xff] (!%p292_p2)   ;;  %v2581_v1 = vld [vmem:[%s3715_s1] ss:$16 sps:$4 sm:$0xff] (!%p292_p2)   ;;  %s2276_s25 = sshll.u32 (!%p292_p2), %s2271_s14, 1  ;;  %s343_s11 = sld [smem:[#allocation3]] (!%p292_p2) }
   0x8   : > { %295 = sbr.rel (%p292_p2) target bundleno = 806 (0x326), region = 56  ;;  %762 = vmatprep.subr.bf16.mxu0 (!%p292_p2), %v2579_v0  ;;  %v2582_v2 = vld [vmem:[%s3715_s1 + $0x24] ss:$16 sps:$4 sm:$0xff] (!%p292_p2)   ;;  %v2584_v3 = vld [vmem:[%s3715_s1 + $0x20] ss:$16 sps:$4 sm:$0xff] (!%p292_p2)   ;;  %p329_p3 = scmp.lt.s32.totalorder (!%p292_p2), %s2276_s25, 5 }
   0x9   : > { %763 = vmatpush1.bf16.msra.mxu0 (!%p292_p2), %v2581_v1  ;;  %v2585_v4 = vld [vmem:[%s3715_s1 + $0x44] ss:$16 sps:$4 sm:$0xff] (!%p292_p2)   ;;  %v2587_v5 = vld [vmem:[%s3715_s1 + $0x40] ss:$16 sps:$4 sm:$0xff] (!%p292_p2)   ;;  %v2624_v13 = vld [vmem:[%s3715_s1 + $0xc] ss:$16 sps:$4 sm:$0xff] (!%p292_p2)  }
   0xa   : > { %764 = vmatprep.subr.bf16.mxu0 (!%p292_p2), %v2582_v2  ;;  %v2588_v6 = vld [vmem:[%s3715_s1 + $0x64] ss:$16 sps:$4 sm:$0xff] (!%p292_p2)   ;;  %v2590_v7 = vld [vmem:[%s3715_s1 + $0x60] ss:$16 sps:$4 sm:$0xff] (!%p292_p2)   ;;  %v2626_v14 = vld [vmem:[%s3715_s1 + $0x8] ss:$16 sps:$4 sm:$0xff] (!%p292_p2)   ;;  %805 = vmatprep.subr.bf16.mxu1 (!%p292_p2), %v2624_v13 }
   0xb   : > { %v2591_v8 = vld [vmem:[%s3715_s1 + $0x84] ss:$16 sps:$4 sm:$0xff] (!%p292_p2)   ;;  %v2593_v9 = vld [vmem:[%s3715_s1 + $0x80] ss:$16 sps:$4 sm:$0xff] (!%p292_p2)   ;;  %806 = vmatpush1.bf16.msra.mxu1 (!%p292_p2), %v2626_v14  ;;  %v2630_v16 = vld [vmem:[%s3715_s1 + $0x2c] ss:$16 sps:$4 sm:$0xff] (!%p292_p2)  }
   0xc   : > { %v2594_v10 = vld [vmem:[%s3715_s1 + $0xa4] ss:$16 sps:$4 sm:$0xff] (!%p292_p2)   ;;  %v2596_v11 = vld [vmem:[%s3715_s1 + $0xa0] ss:$16 sps:$4 sm:$0xff] (!%p292_p2)   ;;  %807 = vmatprep.subr.bf16.mxu1 (!%p292_p2), %v2630_v16  ;;  %v2635_v19 = vld [vmem:[%s3715_s1 + $0x28] ss:$16 sps:$4 sm:$0xff] (!%p292_p2)  }
   0xd   : > { %765 = vmatpush1.bf16.msra.mxu0 (!%p292_p2), %v2584_v3  ;;  %v2597_v12 = vld [vmem:[%s3715_s1 + $0xc4] ss:$16 sps:$4 sm:$0xff] (!%p292_p2)   ;;  %v2599_v15 = vld [vmem:[%s3715_s1 + $0xc0] ss:$16 sps:$4 sm:$0xff] (!%p292_p2)   ;;  %v2636_v21 = vld [vmem:[%s3715_s1 + $0x4c] ss:$16 sps:$4 sm:$0xff] (!%p292_p2)  }
   0xe   : > { %766 = vmatprep.subr.bf16.mxu0 (!%p292_p2), %v2585_v4  ;;  %v2600_v17 = vld [vmem:[%s3715_s1 + $0xe4] ss:$16 sps:$4 sm:$0xff] (!%p292_p2)   ;;  %v2602_v20 = vld [vmem:[%s3715_s1 + $0xe0] ss:$16 sps:$4 sm:$0xff] (!%p292_p2)   ;;  %v2638_v23 = vld [vmem:[%s3715_s1 + $0x48] ss:$16 sps:$4 sm:$0xff] (!%p292_p2)  }
   0xf   : > { %s3725_s25 = smov (!%p329_p3, %s2276_s25), 5  ;;  %v2603_v22 = vld [vmem:[%s3715_s1 + $0x104] ss:$16 sps:$4 sm:$0xff]   ;;  %808 = vmatpush1.bf16.msra.mxu1 %v2635_v19  ;;  %v2639_v24 = vld [vmem:[%s3715_s1 + $0x6c] ss:$16 sps:$4 sm:$0xff]  }
  0x10   : > { %s2510_s15 = sshll.u32 %s3725_s25, 3  ;;  %809 = vmatprep.subr.bf16.mxu1 %v2636_v21  ;;  %v2605_v25 = vld [vmem:[%s3715_s1 + $0x100] ss:$16 sps:$4 sm:$0xff]   ;;  %v2606_v26 = vld [vmem:[%s3715_s1 + $0x124] ss:$16 sps:$4 sm:$0xff]  }
  0x11   : > { %767 = vmatpush1.bf16.msra.mxu0 %v2587_v5  ;;  %s3027_s26 = scalar_lea.vmem %s3714_s0, %s2510_s15  ;;  %v2641_v27 = vld [vmem:[%s3715_s1 + $0x68] ss:$16 sps:$4 sm:$0xff]   ;;  %v2642_v28 = vld [vmem:[%s3715_s1 + $0x8c] ss:$16 sps:$4 sm:$0xff]   ;;  %v2608_v29 = vld [vmem:[%s3715_s1 + $0x120] ss:$16 sps:$4 sm:$0xff]   ;;  %s339_s18 = scalar_lea.vmem %s3723_s9, %s2510_s15 }
  0x12   : > { %768 = vmatprep.subr.bf16.mxu0 %v2588_v6  ;;  %v2634_v18 = vld [vmem:[%s3027_s26 + $0x4] ss:$8 sps:$4 sm:$0xff]   ;;  %v2644_v31 = vld [vmem:[%s3715_s1 + $0x88] ss:$16 sps:$4 sm:$0xff]   ;;  %v2611_v33 = vld [vmem:[%s3715_s1 + $0x140] ss:$16 sps:$4 sm:$0xff]  }
  0x13   : > { %794 = vmatprep.mubr.bf16.mxu0 %v2634_v18  ;;  %837 = vmatprep.mubr.bf16.mxu1 %v2634_v18  ;;  %v2609_v30 = vld [vmem:[%s3715_s1 + $0x144] ss:$16 sps:$4 sm:$0xff]   ;;  %v2645_v32 = vld [vmem:[%s3715_s1 + $0xac] ss:$16 sps:$4 sm:$0xff]   ;;  %v2647_v35 = vld [vmem:[%s3715_s1 + $0xa8] ss:$16 sps:$4 sm:$0xff]  }
  0x14   : > { %810 = vmatpush1.bf16.msra.mxu1 %v2638_v23  ;;  %v2612_v34 = vld [vmem:[%s3715_s1 + $0x164] ss:$16 sps:$4 sm:$0xff]   ;;  %v2648_v36 = vld [vmem:[%s3715_s1 + $0xcc] ss:$16 sps:$4 sm:$0xff]   ;;  %v2614_v37 = vld [vmem:[%s3715_s1 + $0x160] ss:$16 sps:$4 sm:$0xff]  }
  0x15   : > { %769 = vmatpush1.bf16.msra.mxu0 %v2590_v7  ;;  %811 = vmatprep.subr.bf16.mxu1 %v2639_v24  ;;  %v2615_v38 = vld [vmem:[%s3715_s1 + $0x184] ss:$16 sps:$4 sm:$0xff]   ;;  %v2650_v39 = vld [vmem:[%s3715_s1 + $0xc8] ss:$16 sps:$4 sm:$0xff]   ;;  %v2651_v40 = vld [vmem:[%s3715_s1 + $0xec] ss:$16 sps:$4 sm:$0xff]  }
  0x16   : > { %770 = vmatprep.subr.bf16.mxu0 %v2591_v8  ;;  %v2617_v41 = vld [vmem:[%s3715_s1 + $0x180] ss:$16 sps:$4 sm:$0xff]   ;;  %v2618_v42 = vld [vmem:[%s3715_s1 + $0x1a4] ss:$16 sps:$4 sm:$0xff]   ;;  %v2653_v43 = vld [vmem:[%s3715_s1 + $0xe8] ss:$16 sps:$4 sm:$0xff]  }
  0x17   : > { %v2654_v44 = vld [vmem:[%s3715_s1 + $0x10c] ss:$16 sps:$4 sm:$0xff]   ;;  %v2620_v45 = vld [vmem:[%s3715_s1 + $0x1a0] ss:$16 sps:$4 sm:$0xff]   ;;  %v2621_v46 = vld [vmem:[%s3715_s1 + $0x1c4] ss:$16 sps:$4 sm:$0xff]  }
  0x18   : > { %812 = vmatpush1.bf16.msra.mxu1 %v2641_v27  ;;  %v2656_v47 = vld [vmem:[%s3715_s1 + $0x108] ss:$16 sps:$4 sm:$0xff]   ;;  %v2657_v48 = vld [vmem:[%s3715_s1 + $0x12c] ss:$16 sps:$4 sm:$0xff]   ;;  %v2623_v49 = vld [vmem:[%s3715_s1 + $0x1c0] ss:$16 sps:$4 sm:$0xff]  }
  0x19   : > { %771 = vmatpush1.bf16.msra.mxu0 %v2593_v9  ;;  %813 = vmatprep.subr.bf16.mxu1 %v2642_v28  ;;  %v2627_v50 = vld [vmem:[%s3715_s1 + $0x1e4] ss:$16 sps:$4 sm:$0xff]   ;;  %v2659_v51 = vld [vmem:[%s3715_s1 + $0x128] ss:$16 sps:$4 sm:$0xff]   ;;  %v2660_v52 = vld [vmem:[%s3715_s1 + $0x14c] ss:$16 sps:$4 sm:$0xff]  }
  0x1a   : > { %772 = vmatprep.subr.bf16.mxu0 %v2594_v10  ;;  %v2629_v53 = vld [vmem:[%s3715_s1 + $0x1e0] ss:$16 sps:$4 sm:$0xff]   ;;  %v2662_v54 = vld [vmem:[%s3715_s1 + $0x148] ss:$16 sps:$4 sm:$0xff]   ;;  %v2663_v55 = vld [vmem:[%s3715_s1 + $0x16c] ss:$16 sps:$4 sm:$0xff]  }
  0x1b   : > { %v2680_v56 = vld [vmem:[%s3718_s4 + $0x4] ss:$16 sps:$4 sm:$0xff]   ;;  %v2632_v57 = vld [vmem:[%s3027_s26] ss:$8 sps:$4 sm:$0xff]   ;;  %v2666_v59 = vld [vmem:[%s3715_s1 + $0x18c] ss:$16 sps:$4 sm:$0xff]  }
  0x1c   : > { %814 = vmatpush1.bf16.msra.mxu1 %v2644_v31  ;;  %v2665_v58 = vld [vmem:[%s3715_s1 + $0x168] ss:$16 sps:$4 sm:$0xff]   ;;  %v2678_v60 = vld [vmem:[%s3718_s4] ss:$16 sps:$4 sm:$0xff]   ;;  %v2686_v61 = vld [vmem:[%s3718_s4 + $0x24] ss:$16 sps:$4 sm:$0xff]  }
  0x1d   : > { %773 = vmatpush1.bf16.msra.mxu0 %v2596_v11  ;;  %815 = vmatprep.subr.bf16.mxu1 %v2645_v32  ;;  %v2668_v62 = vld [vmem:[%s3715_s1 + $0x188] ss:$16 sps:$4 sm:$0xff]   ;;  %v2669_v63 = vld [vmem:[%s3715_s1 + $0x1ac] ss:$16 sps:$4 sm:$0xff]   ;;  %v2684_v0 = vld [vmem:[%s3718_s4 + $0x20] ss:$16 sps:$4 sm:$0xff]  }
  0x1e   : > { %774 = vmatprep.subr.bf16.mxu0 %v2597_v12  ;;  %v2692_v1 = vld [vmem:[%s3718_s4 + $0x44] ss:$16 sps:$4 sm:$0xff]   ;;  %v2671_v2 = vld [vmem:[%s3715_s1 + $0x1a8] ss:$16 sps:$4 sm:$0xff]   ;;  %v2672_v3 = vld [vmem:[%s3715_s1 + $0x1cc] ss:$16 sps:$4 sm:$0xff]  }
  0x1f   : > { %v2690_v4 = vld [vmem:[%s3718_s4 + $0x40] ss:$16 sps:$4 sm:$0xff]   ;;  %v2698_v5 = vld [vmem:[%s3718_s4 + $0x64] ss:$16 sps:$4 sm:$0xff]   ;;  %v2674_v6 = vld [vmem:[%s3715_s1 + $0x1c8] ss:$16 sps:$4 sm:$0xff]  }
  0x20   : > { %816 = vmatpush1.bf16.msra.mxu1 %v2647_v35  ;;  %v2675_v7 = vld [vmem:[%s3715_s1 + $0x1ec] ss:$16 sps:$4 sm:$0xff]   ;;  %v2696_v8 = vld [vmem:[%s3718_s4 + $0x60] ss:$16 sps:$4 sm:$0xff]   ;;  %v2704_v9 = vld [vmem:[%s3718_s4 + $0x84] ss:$16 sps:$4 sm:$0xff]  }
  0x21   : > { %775 = vmatpush1.bf16.msra.mxu0 %v2599_v15  ;;  %817 = vmatprep.subr.bf16.mxu1 %v2648_v36  ;;  %v2677_v10 = vld [vmem:[%s3715_s1 + $0x1e8] ss:$16 sps:$4 sm:$0xff]   ;;  %v2683_v11 = vld [vmem:[%s3718_s4 + $0xc] ss:$16 sps:$4 sm:$0xff]   ;;  %v2702_v12 = vld [vmem:[%s3718_s4 + $0x80] ss:$16 sps:$4 sm:$0xff]  }
  0x22   : > { %776 = vmatprep.subr.bf16.mxu0 %v2600_v17  ;;  %v2710_v13 = vld [vmem:[%s3718_s4 + $0xa4] ss:$16 sps:$4 sm:$0xff]   ;;  %v2681_v14 = vld [vmem:[%s3718_s4 + $0x8] ss:$16 sps:$4 sm:$0xff]   ;;  %v2708_v15 = vld [vmem:[%s3718_s4 + $0xa0] ss:$16 sps:$4 sm:$0xff]  }
  0x23   : > { %v2689_v16 = vld [vmem:[%s3718_s4 + $0x2c] ss:$16 sps:$4 sm:$0xff]   ;;  %v2716_v17 = vld [vmem:[%s3718_s4 + $0xc4] ss:$16 sps:$4 sm:$0xff]   ;;  %v2687_v18 = vld [vmem:[%s3718_s4 + $0x28] ss:$16 sps:$4 sm:$0xff]  }
  0x24   : > { %818 = vmatpush1.bf16.msra.mxu1 %v2650_v39  ;;  %v2714_v19 = vld [vmem:[%s3718_s4 + $0xc0] ss:$16 sps:$4 sm:$0xff]   ;;  %v2722_v21 = vld [vmem:[%s3718_s4 + $0xe4] ss:$16 sps:$4 sm:$0xff]   ;;  %v2701_v24 = vld [vmem:[%s3718_s4 + $0x6c] ss:$16 sps:$4 sm:$0xff]  }
  0x25   : > { %777 = vmatpush1.bf16.msra.mxu0 %v2602_v20  ;;  %819 = vmatprep.subr.bf16.mxu1 %v2651_v40  ;;  %v2695_v20 = vld [vmem:[%s3718_s4 + $0x4c] ss:$16 sps:$4 sm:$0xff]   ;;  %v2720_v23 = vld [vmem:[%s3718_s4 + $0xe0] ss:$16 sps:$4 sm:$0xff]   ;;  %s342_s26 = sld [smem:[#allocation2]] }
  0x26   : > { %778 = vmatprep.subr.bf16.mxu0 %v2603_v22  ;;  %v2693_v22 = vld [vmem:[%s3718_s4 + $0x48] ss:$16 sps:$4 sm:$0xff]   ;;  %v2726_v27 = vld [vmem:[%s3718_s4 + $0x100] ss:$16 sps:$4 sm:$0xff]   ;;  %v2707_v28 = vld [vmem:[%s3718_s4 + $0x8c] ss:$16 sps:$4 sm:$0xff]  }
  0x27   : > { %v2732_v31 = vld [vmem:[%s3718_s4 + $0x120] ss:$16 sps:$4 sm:$0xff]   ;;  %v2713_v32 = vld [vmem:[%s3718_s4 + $0xac] ss:$16 sps:$4 sm:$0xff]  }
  0x28   : > { %820 = vmatpush1.bf16.msra.mxu1 %v2653_v43  ;;  %v2738_v35 = vld [vmem:[%s3718_s4 + $0x140] ss:$16 sps:$4 sm:$0xff]   ;;  %v2719_v36 = vld [vmem:[%s3718_s4 + $0xcc] ss:$16 sps:$4 sm:$0xff]  }
  0x29   : > { %779 = vmatpush1.bf16.msra.mxu0 %v2605_v25  ;;  %821 = vmatprep.subr.bf16.mxu1 %v2654_v44  ;;  %v2728_v25 = vld [vmem:[%s3718_s4 + $0x104] ss:$16 sps:$4 sm:$0xff]   ;;  %v2744_v39 = vld [vmem:[%s3718_s4 + $0x160] ss:$16 sps:$4 sm:$0xff]   ;;  %v2725_v40 = vld [vmem:[%s3718_s4 + $0xec] ss:$16 sps:$4 sm:$0xff]  }
  0x2a   : > { %780 = vmatprep.subr.bf16.mxu0 %v2606_v26  ;;  %v2699_v26 = vld [vmem:[%s3718_s4 + $0x68] ss:$16 sps:$4 sm:$0xff]   ;;  %v2750_v43 = vld [vmem:[%s3718_s4 + $0x180] ss:$16 sps:$4 sm:$0xff]   ;;  %v2731_v44 = vld [vmem:[%s3718_s4 + $0x10c] ss:$16 sps:$4 sm:$0xff]  }
  0x2c   : > { %822 = vmatpush1.bf16.msra.mxu1 %v2656_v47  ;;  %v2756_v47 = vld [vmem:[%s3718_s4 + $0x1a0] ss:$16 sps:$4 sm:$0xff]  }
  0x2d   : > { %781 = vmatpush1.bf16.msra.mxu0 %v2608_v29  ;;  %823 = vmatprep.subr.bf16.mxu1 %v2657_v48  ;;  %v2734_v29 = vld [vmem:[%s3718_s4 + $0x124] ss:$16 sps:$4 sm:$0xff]   ;;  %v2737_v48 = vld [vmem:[%s3718_s4 + $0x12c] ss:$16 sps:$4 sm:$0xff]  }
  0x2e   : > { %782 = vmatprep.subr.bf16.mxu0 %v2609_v30  ;;  %v2705_v30 = vld [vmem:[%s3718_s4 + $0x88] ss:$16 sps:$4 sm:$0xff]  }
  0x30   : > { %824 = vmatpush1.bf16.msra.mxu1 %v2659_v51  ;;  %v2741_v51 = vld [vmem:[%s3718_s4 + $0x148] ss:$16 sps:$4 sm:$0xff]  }
  0x31   : > { %783 = vmatpush1.bf16.msra.mxu0 %v2611_v33  ;;  %825 = vmatprep.subr.bf16.mxu1 %v2660_v52  ;;  %v2740_v33 = vld [vmem:[%s3718_s4 + $0x144] ss:$16 sps:$4 sm:$0xff]   ;;  %v2749_v52 = vld [vmem:[%s3718_s4 + $0x16c] ss:$16 sps:$4 sm:$0xff]  }
  0x32   : > { %784 = vmatprep.subr.bf16.mxu0 %v2612_v34  ;;  %v2711_v34 = vld [vmem:[%s3718_s4 + $0xa8] ss:$16 sps:$4 sm:$0xff]  }
  0x34   : > { %826 = vmatpush1.bf16.msra.mxu1 %v2662_v54  ;;  %v2755_v54 = vld [vmem:[%s3718_s4 + $0x18c] ss:$16 sps:$4 sm:$0xff]  }
  0x35   : > { %785 = vmatpush1.bf16.msra.mxu0 %v2614_v37  ;;  %827 = vmatprep.subr.bf16.mxu1 %v2663_v55  ;;  %v2746_v37 = vld [vmem:[%s3718_s4 + $0x164] ss:$16 sps:$4 sm:$0xff]   ;;  %v2753_v55 = vld [vmem:[%s3718_s4 + $0x188] ss:$16 sps:$4 sm:$0xff]  }
  0x36   : > { %786 = vmatprep.subr.bf16.mxu0 %v2615_v38  ;;  %v2717_v38 = vld [vmem:[%s3718_s4 + $0xc8] ss:$16 sps:$4 sm:$0xff]  }
  0x38   : > { %828 = vmatpush1.bf16.msra.mxu1 %v2665_v58  ;;  %v2764_v58 = vld [vmem:[%s3718_s4 + $0x1c4] ss:$16 sps:$4 sm:$0xff]  }
  0x39   : > { %787 = vmatpush1.bf16.msra.mxu0 %v2617_v41  ;;  %829 = vmatprep.subr.bf16.mxu1 %v2666_v59  ;;  %v2752_v41 = vld [vmem:[%s3718_s4 + $0x184] ss:$16 sps:$4 sm:$0xff]   ;;  %v2767_v59 = vld [vmem:[%s3718_s4 + $0x1cc] ss:$16 sps:$4 sm:$0xff]  }
  0x3a   : > { %788 = vmatprep.subr.bf16.mxu0 %v2618_v42  ;;  %v2723_v42 = vld [vmem:[%s3718_s4 + $0xe8] ss:$16 sps:$4 sm:$0xff]  }
  0x3c   : > { %830 = vmatpush1.bf16.msra.mxu1 %v2668_v62  ;;  %v2770_v62 = vld [vmem:[%s3718_s4 + $0x1e4] ss:$16 sps:$4 sm:$0xff]  }
  0x3d   : > { %789 = vmatpush1.bf16.msra.mxu0 %v2620_v45  ;;  %831 = vmatprep.subr.bf16.mxu1 %v2669_v63  ;;  %v2758_v45 = vld [vmem:[%s3718_s4 + $0x1a4] ss:$16 sps:$4 sm:$0xff]   ;;  %v2773_v63 = vld [vmem:[%s3718_s4 + $0x1ec] ss:$16 sps:$4 sm:$0xff]  }
  0x3e   : > { %790 = vmatprep.subr.bf16.mxu0 %v2621_v46  ;;  %v2729_v46 = vld [vmem:[%s3718_s4 + $0x108] ss:$16 sps:$4 sm:$0xff]  }
  0x40   : > { %832 = vmatpush1.bf16.msra.mxu1 %v2671_v2  ;;  %v2776_v2 = vld [vmem:[%s3718_s4 + $0x204] ss:$16 sps:$4 sm:$0xff]  }
  0x41   : > { %791 = vmatpush1.bf16.msra.mxu0 %v2623_v49  ;;  %833 = vmatprep.subr.bf16.mxu1 %v2672_v3  ;;  %v2735_v49 = vld [vmem:[%s3718_s4 + $0x128] ss:$16 sps:$4 sm:$0xff]   ;;  %v2779_v3 = vld [vmem:[%s3718_s4 + $0x20c] ss:$16 sps:$4 sm:$0xff]  }
  0x42   : > { %792 = vmatprep.subr.bf16.mxu0 %v2627_v50  ;;  %v2743_v50 = vld [vmem:[%s3718_s4 + $0x14c] ss:$16 sps:$4 sm:$0xff]  }
  0x44   : > { %834 = vmatpush1.bf16.msra.mxu1 %v2674_v6 }
  0x45   : > { %793 = vmatpush1.bf16.msra.mxu0 %v2629_v53  ;;  %835 = vmatprep.subr.bf16.mxu1 %v2675_v7  ;;  %v2747_v53 = vld [vmem:[%s3718_s4 + $0x168] ss:$16 sps:$4 sm:$0xff]   ;;  %v410_v7 = vld [vmem:[%s3716_s2] sm:$0xf] }
  0x46   : > { %1667 = vmatprep.subr.bf16.mxu0 %v2680_v56  ;;  %v2761_v56 = vld [vmem:[%s3718_s4 + $0x1ac] ss:$16 sps:$4 sm:$0xff]  }
  0x48   : > { %795 = vmatmul.mubr.bf16.vlgmr.msra.gmra.mrb[0].mxu0 %v2632_v57  ;;  %836 = vmatpush1.bf16.msra.mxu1 %v2677_v10 }
  0x49   : > { %1668 = vmatpush1.bf16.msra.mxu0 %v2678_v60  ;;  %1753 = vmatprep.subr.bf16.mxu1 %v2683_v11  ;;  %v2762_v60 = vld [vmem:[%s3718_s4 + $0x1c0] ss:$16 sps:$4 sm:$0xff]  }
  0x4a   : > { %1669 = vmatprep.subr.bf16.mxu0 %v2686_v61  ;;  %v2765_v61 = vld [vmem:[%s3718_s4 + $0x1c8] ss:$16 sps:$4 sm:$0xff]  }
  0x4b   : > { %838 = vmatmul.mubr.bf16.vlgmr.msra.gmra.mrb[0].mxu1 %v2632_v57  ;;  %v2759_v57 = vld [vmem:[%s3718_s4 + $0x1a8] ss:$16 sps:$4 sm:$0xff]  }
  0x4c   : > { %1754 = vmatpush1.bf16.msra.mxu1 %v2681_v14 }
  0x4d   : > { %1670 = vmatpush1.bf16.msra.mxu0 %v2684_v0  ;;  %1755 = vmatprep.subr.bf16.mxu1 %v2689_v16  ;;  %v2768_v0 = vld [vmem:[%s3718_s4 + $0x1e0] ss:$16 sps:$4 sm:$0xff]  }
  0x4e   : > { %1671 = vmatprep.subr.bf16.mxu0 %v2692_v1  ;;  %v2771_v1 = vld [vmem:[%s3718_s4 + $0x1e8] ss:$16 sps:$4 sm:$0xff]  }
  0x50   : > { %1756 = vmatpush1.bf16.msra.mxu1 %v2687_v18 }
  0x51   : > { %1672 = vmatpush1.bf16.msra.mxu0 %v2690_v4  ;;  %1757 = vmatprep.subr.bf16.mxu1 %v2695_v20  ;;  %v412_v4 = vlaneseq }
  0x52   : > { %1673 = vmatprep.subr.bf16.mxu0 %v2698_v5 }
  0x53   : > { %v3376_v5 = vshrl.u32 %v412_v4, 7 }
  0x54   : > { %1758 = vmatpush1.bf16.msra.mxu1 %v2693_v22 }
  0x55   : > { %1674 = vmatpush1.bf16.msra.mxu0 %v2696_v8  ;;  %1759 = vmatprep.subr.bf16.mxu1 %v2701_v24  ;;  %v414_v6 = vsub.s32 0, %v3376_v5  ;;  %v418_v8 = vsub.s32 1, %v3376_v5 }
  0x56   : > { %1675 = vmatprep.subr.bf16.mxu0 %v2704_v9 }
  0x57   : > { %v415_v9 = vrot.slane %v410_v7, %v414_v6  ;;  %v419_v10 = vrot.slane %v410_v7, %v418_v8 }
  0x58   : > { %1760 = vmatpush1.bf16.msra.mxu1 %v2699_v26 }
  0x59   : > { %1676 = vmatpush1.bf16.msra.mxu0 %v2702_v12  ;;  %1761 = vmatprep.subr.bf16.mxu1 %v2707_v28  ;;  %v3387_v12 = vstv %s342_s26 }
  0x5a   : > { %1677 = vmatprep.subr.bf16.mxu0 %v2710_v13 }
  0x5c   : > { %1762 = vmatpush1.bf16.msra.mxu1 %v2705_v30  ;;  %v2774_v30 = vld [vmem:[%s3718_s4 + $0x200] ss:$16 sps:$4 sm:$0xff]  }
  0x5d   : > { %1678 = vmatpush1.bf16.msra.mxu0 %v2708_v15  ;;  %1763 = vmatprep.subr.bf16.mxu1 %v2713_v32  ;;  %v2782_v32 = vld [vmem:[%s3718_s4 + $0x224] ss:$16 sps:$4 sm:$0xff]  }
  0x5e   : > { %1679 = vmatprep.subr.bf16.mxu0 %v2716_v17 }
  0x60   : > { %1764 = vmatpush1.bf16.msra.mxu1 %v2711_v34  ;;  %v2780_v34 = vld [vmem:[%s3718_s4 + $0x220] ss:$16 sps:$4 sm:$0xff]  }
  0x61   : > { %1680 = vmatpush1.bf16.msra.mxu0 %v2714_v19  ;;  %1765 = vmatprep.subr.bf16.mxu1 %v2719_v36  ;;  %v422_v36 = vsub.s32 2, %v3376_v5 }
  0x62   : > { %1681 = vmatprep.subr.bf16.mxu0 %v2722_v21 }
  0x64   : > { %1766 = vmatpush1.bf16.msra.mxu1 %v2717_v38  ;;  %v2791_v38 = vld [vmem:[%s3718_s4 + $0x24c] ss:$16 sps:$4 sm:$0xff]  }
  0x65   : > { %1682 = vmatpush1.bf16.msra.mxu0 %v2720_v23  ;;  %1767 = vmatprep.subr.bf16.mxu1 %v2725_v40  ;;  %v2786_v40 = vld [vmem:[%s3718_s4 + $0x240] ss:$16 sps:$4 sm:$0xff]  }
  0x66   : > { %1683 = vmatprep.subr.bf16.mxu0 %v2728_v25 }
  0x68   : > { %1768 = vmatpush1.bf16.msra.mxu1 %v2723_v42  ;;  %v423_v42 = vrot.slane %v410_v7, %v422_v36 }
  0x69   : > { %1684 = vmatpush1.bf16.msra.mxu0 %v2726_v27  ;;  %1769 = vmatprep.subr.bf16.mxu1 %v2731_v44  ;;  %v2797_v44 = vld [vmem:[%s3718_s4 + $0x26c] ss:$16 sps:$4 sm:$0xff]  }
  0x6a   : > { %1685 = vmatprep.subr.bf16.mxu0 %v2734_v29 }
  0x6c   : > { %1770 = vmatpush1.bf16.msra.mxu1 %v2729_v46 }
  0x6d   : > { %1686 = vmatpush1.bf16.msra.mxu0 %v2732_v31  ;;  %1771 = vmatprep.subr.bf16.mxu1 %v2737_v48  ;;  %v2777_v31 = vld [vmem:[%s3718_s4 + $0x208] ss:$16 sps:$4 sm:$0xff]  }
  0x6e   : > { %1687 = vmatprep.subr.bf16.mxu0 %v2740_v33  ;;  %v2785_v33 = vld [vmem:[%s3718_s4 + $0x22c] ss:$16 sps:$4 sm:$0xff]   ;;  %v2795_v48 = vld [vmem:[%s3718_s4 + $0x268] ss:$16 sps:$4 sm:$0xff]  }
  0x70   : > { %1772 = vmatpush1.bf16.msra.mxu1 %v2735_v49 }
  0x71   : > { %1688 = vmatpush1.bf16.msra.mxu0 %v2738_v35  ;;  %1773 = vmatprep.subr.bf16.mxu1 %v2743_v50  ;;  %v2783_v35 = vld [vmem:[%s3718_s4 + $0x228] ss:$16 sps:$4 sm:$0xff]  }
  0x72   : > { %1689 = vmatprep.subr.bf16.mxu0 %v2746_v37  ;;  %v2788_v37 = vld [vmem:[%s3718_s4 + $0x244] ss:$16 sps:$4 sm:$0xff]  }
  0x74   : > { %1774 = vmatpush1.bf16.msra.mxu1 %v2741_v51  ;;  %v2800_v51 = vld [vmem:[%s3718_s4 + $0x284] ss:$16 sps:$4 sm:$0xff]  }
  0x75   : > { %1690 = vmatpush1.bf16.msra.mxu0 %v2744_v39  ;;  %1775 = vmatprep.subr.bf16.mxu1 %v2749_v52  ;;  %v426_v39 = vsub.s32 3, %v3376_v5  ;;  %v2803_v52 = vld [vmem:[%s3718_s4 + $0x28c] ss:$16 sps:$4 sm:$0xff]  }
  0x76   : > { %1691 = vmatprep.subr.bf16.mxu0 %v2752_v41  ;;  %v2789_v41 = vld [vmem:[%s3718_s4 + $0x248] ss:$16 sps:$4 sm:$0xff]  }
  0x78   : > { %1776 = vmatpush1.bf16.msra.mxu1 %v2747_v53 }
  0x79   : > { %1692 = vmatpush1.bf16.msra.mxu0 %v2750_v43  ;;  %1777 = vmatprep.subr.bf16.mxu1 %v2755_v54  ;;  %v2794_v43 = vld [vmem:[%s3718_s4 + $0x264] ss:$16 sps:$4 sm:$0xff]  }
  0x7a   : > { %1693 = vmatprep.subr.bf16.mxu0 %v2758_v45  ;;  %v427_v45 = vrot.slane %v410_v7, %v426_v39 }
  0x7c   : > { %1778 = vmatpush1.bf16.msra.mxu1 %v2753_v55 }
  0x7d   : > { %1694 = vmatpush1.bf16.msra.mxu0 %v2756_v47  ;;  %1779 = vmatprep.subr.bf16.mxu1 %v2761_v56  ;;  %v2792_v47 = vld [vmem:[%s3718_s4 + $0x260] ss:$16 sps:$4 sm:$0xff]  }
  0x7e   : > { %1695 = vmatprep.subr.bf16.mxu0 %v2764_v58 }
  0x80   : > { %1780 = vmatpush1.bf16.msra.mxu1 %v2759_v57 }
  0x81   : > { %1781 = vmatprep.subr.bf16.mxu1 %v2767_v59  ;;  %1696 = vmatpush1.bf16.msra.mxu0 %v2762_v60  ;;  %v2798_v60 = vld [vmem:[%s3718_s4 + $0x280] ss:$16 sps:$4 sm:$0xff]  }
  0x82   : > { %1697 = vmatprep.subr.bf16.mxu0 %v2770_v62 }
  0x84   : > { %1782 = vmatpush1.bf16.msra.mxu1 %v2765_v61  ;;  %v2801_v61 = vld [vmem:[%s3718_s4 + $0x288] ss:$16 sps:$4 sm:$0xff]  }
  0x85   : > { %1783 = vmatprep.subr.bf16.mxu1 %v2773_v63  ;;  %1698 = vmatpush1.bf16.msra.mxu0 %v2768_v0  ;;  %v2806_v0 = vld [vmem:[%s3718_s4 + $0x2a4] ss:$16 sps:$4 sm:$0xff]  }
  0x86   : > { %1710 = vmatprep.subr.bf16.mxu0 %v2776_v2 }
  0x88   : > { %1784 = vmatpush1.bf16.msra.mxu1 %v2771_v1  ;;  %v2809_v1 = vld [vmem:[%s3718_s4 + $0x2ac] ss:$16 sps:$4 sm:$0xff]  }
  0x89   : > { %1796 = vmatprep.subr.bf16.mxu1 %v2779_v3 }
 0x11b   : > { %v796_v11 = vpop.f32.mrb[0].mxu0 }
 0x11c   : > { %v797_v13 = vadd.f32 %v796_v11, %v415_v9  ;;  %v798_v14 = vpop.f32.mrb[1].mxu0  ;;  %v2807_v11 = vld [vmem:[%s3718_s4 + $0x2a8] ss:$16 sps:$4 sm:$0xff]  }
 0x11d   : > { %v799_v15 = vadd.f32 %v798_v14, %v419_v10  ;;  %v800_v16 = vpop.f32.mrb[2].mxu0  ;;  %v2815_v14 = vld [vmem:[%s3718_s4 + $0x2cc] ss:$16 sps:$4 sm:$0xff]  }
 0x11e   : > { %v857_v17 = vmul.f32 %v3387_v12, %v797_v13  ;;  %v801_v18 = vadd.f32 %v800_v16, %v415_v9  ;;  %v802_v19 = vpop.f32.mrb[3].mxu0  ;;  %vm848_vm0 = vcmp.gt.f32.partialorder %v797_v13, 0.0  ;;  %v839_v46 = vpop.f32.mrb[0].mxu1  ;;  %v2813_v16 = vld [vmem:[%s3718_s4 + $0x2c8] ss:$16 sps:$4 sm:$0xff]  }
 0x11f   : > { %v858_v20 = vmul.f32 %v3387_v12, %v799_v15  ;;  %v803_v21 = vadd.f32 %v802_v19, %v419_v10  ;;  %vm849_vm1 = vcmp.gt.f32.partialorder %v799_v15, 0.0  ;;  %v840_v49 = vadd.f32 %v839_v46, %v423_v42  ;;  %v841_v50 = vpop.f32.mrb[1].mxu1  ;;  %v2804_v10 = vld [vmem:[%s3718_s4 + $0x2a0] ss:$16 sps:$4 sm:$0xff]   ;;  %v2855_v46 = vld [vmem:[%s3718_s4 + $0x3a8] ss:$16 sps:$4 sm:$0xff]  }
 0x120   : > { %vm852_vm2 = vcmp.gt.f32.partialorder %v801_v18, 0.0  ;;  %v861_v22 = vmul.f32 %v3387_v12, %v801_v18  ;;  %v865_v24 = vsel %vm848_vm0, %v797_v13, %v857_v17  ;;  %v842_v53 = vadd.f32 %v841_v50, %v427_v45  ;;  %v843_v54 = vpop.f32.mrb[2].mxu1  ;;  %v2818_v17 = vld [vmem:[%s3718_s4 + $0x2e4] ss:$16 sps:$4 sm:$0xff]   ;;  %v2816_v19 = vld [vmem:[%s3718_s4 + $0x2e0] ss:$16 sps:$4 sm:$0xff]  }
 0x121   : > { %vm853_vm3 = vcmp.gt.f32.partialorder %v803_v21, 0.0  ;;  %v862_v23 = vmul.f32 %v3387_v12, %v803_v21  ;;  %v866_v27 = vsel %vm849_vm1, %v799_v15, %v858_v20  ;;  %vm850_vm4 = vcmp.gt.f32.partialorder %v840_v49, 0.0  ;;  %v845_v57 = vpop.f32.mrb[3].mxu1  ;;  %v2810_v15 = vld [vmem:[%s3718_s4 + $0x2c0] ss:$16 sps:$4 sm:$0xff]  }
 0x122   : > { %v869_v25 = vsel %vm852_vm2, %v801_v18, %v861_v22  ;;  %v859_v55 = vmul.f32 %v3387_v12, %v840_v49  ;;  %v844_v56 = vadd.f32 %v843_v54, %v423_v42  ;;  %vm851_vm5 = vcmp.gt.f32.partialorder %v842_v53, 0.0  ;;  %v2821_v18 = vld [vmem:[%s3718_s4 + $0x2ec] ss:$16 sps:$4 sm:$0xff]   ;;  %v2819_v20 = vld [vmem:[%s3718_s4 + $0x2e8] ss:$16 sps:$4 sm:$0xff]  }
 0x123   : > { %v873_v26 = vpack.c.bf16 %v869_v25, %v865_v24  ;;  %v870_v28 = vsel %vm853_vm3, %v803_v21, %v862_v23  ;;  %v860_v58 = vmul.f32 %v3387_v12, %v842_v53  ;;  %v846_v59 = vadd.f32 %v845_v57, %v427_v45  ;;  %v2824_v21 = vld [vmem:[%s3718_s4 + $0x304] ss:$16 sps:$4 sm:$0xff]   ;;  %v2827_v22 = vld [vmem:[%s3718_s4 + $0x30c] ss:$16 sps:$4 sm:$0xff]   ;;  %v2822_v23 = vld [vmem:[%s3718_s4 + $0x300] ss:$16 sps:$4 sm:$0xff]  }
 0x124   : > { %v874_v29 = vpack.c.bf16 %v870_v28, %v866_v27  ;;  %v867_v62 = vsel %vm850_vm4, %v840_v49, %v859_v55  ;;  %vm854_vm6 = vcmp.gt.f32.partialorder %v844_v56, 0.0  ;;  %v863_v63 = vmul.f32 %v3387_v12, %v844_v56  ;;  %v2825_v24 = vld [vmem:[%s3718_s4 + $0x308] ss:$16 sps:$4 sm:$0xff]   ;;  %v2830_v25 = vld [vmem:[%s3718_s4 + $0x324] ss:$16 sps:$4 sm:$0xff]  }
 0x125   : > { %vm855_vm7 = vcmp.gt.f32.partialorder %v846_v59, 0.0  ;;  %v864_v2 = vmul.f32 %v3387_v12, %v846_v59  ;;  %v868_v3 = vsel %vm851_vm5, %v842_v53, %v860_v58  ;;  %v2812_v12 = vld [vmem:[%s3718_s4 + $0x2c4] ss:$16 sps:$4 sm:$0xff]   ;;  %v2828_v27 = vld [vmem:[%s3718_s4 + $0x320] ss:$16 sps:$4 sm:$0xff]  }
 0x126   : > { %1699 = vmatprep.mubr.bf16.mxu0 %v874_v29  ;;  %1785 = vmatprep.mubr.bf16.mxu1 %v874_v29  ;;  %v871_v4 = vsel %vm854_vm6, %v844_v56, %v863_v63  ;;  %v2831_v28 = vld [vmem:[%s3718_s4 + $0x328] ss:$16 sps:$4 sm:$0xff]   ;;  %v2836_v29 = vld [vmem:[%s3718_s4 + $0x344] ss:$16 sps:$4 sm:$0xff]   ;;  %v2852_v45 = vld [vmem:[%s3718_s4 + $0x3a0] ss:$16 sps:$4 sm:$0xff]  }
 0x127   : > { %1700 = vmatmul.mubr.bf16.vlgmr.msra.gmra.mrb[4].mxu0 %v873_v26  ;;  %1786 = vmatmul.mubr.bf16.vlgmr.msra.gmra.mrb[4].mxu1 %v873_v26  ;;  %v3464_v7 = vpack.c.bf16 %v871_v4, %v867_v62  ;;  %v872_v9 = vsel %vm855_vm7, %v846_v59, %v864_v2  ;;  %v2833_v26 = vld [vmem:[%s3718_s4 + $0x32c] ss:$16 sps:$4 sm:$0xff]   ;;  %v2849_v42 = vld [vmem:[%s3718_s4 + $0x388] ss:$16 sps:$4 sm:$0xff]   ;;  %v2858_v49 = vld [vmem:[%s3718_s4 + $0x3c0] ss:$16 sps:$4 sm:$0xff]  }
 0x128   : > { %1711 = vmatpush1.bf16.msra.mxu0 %v2774_v30  ;;  %1797 = vmatpush1.bf16.msra.mxu1 %v2777_v31  ;;  %v876_v13 = vpack.c.bf16 %v872_v9, %v868_v3  ;;  %v2839_v30 = vld [vmem:[%s3718_s4 + $0x34c] ss:$16 sps:$4 sm:$0xff]   ;;  %v2834_v31 = vld [vmem:[%s3718_s4 + $0x340] ss:$16 sps:$4 sm:$0xff]   ;;  %v2861_v50 = vld [vmem:[%s3718_s4 + $0x3c8] ss:$16 sps:$4 sm:$0xff]  }
 0x129   : > { %1712 = vmatprep.subr.bf16.mxu0 %v2782_v32  ;;  %1798 = vmatprep.subr.bf16.mxu1 %v2785_v33  ;;  %v2837_v32 = vld [vmem:[%s3718_s4 + $0x348] ss:$16 sps:$4 sm:$0xff]   ;;  %v2842_v33 = vld [vmem:[%s3718_s4 + $0x364] ss:$16 sps:$4 sm:$0xff]   ;;  %v2864_v53 = vld [vmem:[%s3718_s4 + $0x3e0] ss:$16 sps:$4 sm:$0xff]  }
 0x12a   : > { %1742 = vmatprep.mubr.bf16.mxu0 %v876_v13  ;;  %1828 = vmatprep.mubr.bf16.mxu1 %v876_v13  ;;  %v2867_v54 = vld [vmem:[%s3718_s4 + $0x3e8] ss:$16 sps:$4 sm:$0xff]   ;;  %v2870_v55 = vld [vmem:[%s3721_s7 + $0x40] sm:$0xff]   ;;  %v2878_v63 = vld [vmem:[%s3721_s7 + $0x50] sm:$0xff]  }
 0x12b   : > { %v2871_v56 = vld [vmem:[%s3721_s7 + $0xc0] sm:$0xff]   ;;  %v2874_v59 = vld [vmem:[%s3721_s7 + $0x48] sm:$0xff]   ;;  %v2881_v2 = vld [vmem:[%s3721_s7 + $0x90] sm:$0xff]  }
 0x12c   : > { %1713 = vmatpush1.bf16.msra.mxu0 %v2780_v34  ;;  %1799 = vmatpush1.bf16.msra.mxu1 %v2783_v35  ;;  %v2845_v34 = vld [vmem:[%s3718_s4 + $0x36c] ss:$16 sps:$4 sm:$0xff]   ;;  %v2840_v35 = vld [vmem:[%s3718_s4 + $0x360] ss:$16 sps:$4 sm:$0xff]  }
 0x12d   : > { %1714 = vmatprep.subr.bf16.mxu0 %v2788_v37  ;;  %1800 = vmatprep.subr.bf16.mxu1 %v2791_v38  ;;  %v2843_v37 = vld [vmem:[%s3718_s4 + $0x368] ss:$16 sps:$4 sm:$0xff]   ;;  %v2848_v38 = vld [vmem:[%s3718_s4 + $0x384] ss:$16 sps:$4 sm:$0xff]  }
 0x12e   : > { %v2872_v57 = vld [vmem:[%s3721_s7] sm:$0xff]   ;;  %v2877_v62 = vld [vmem:[%s3721_s7 + $0x88] sm:$0xff]   ;;  %v2882_v3 = vld [vmem:[%s3721_s7 + $0x58] sm:$0xff]  }
 0x12f   : > { %v2873_v58 = vld [vmem:[%s3721_s7 + $0x80] sm:$0xff]   ;;  %v2883_v4 = vld [vmem:[%s3721_s7 + $0xd8] sm:$0xff]  }
 0x130   : > { %1715 = vmatpush1.bf16.msra.mxu0 %v2786_v40  ;;  %1801 = vmatpush1.bf16.msra.mxu1 %v2789_v41  ;;  %v2851_v40 = vld [vmem:[%s3718_s4 + $0x38c] ss:$16 sps:$4 sm:$0xff]   ;;  %v2846_v41 = vld [vmem:[%s3718_s4 + $0x380] ss:$16 sps:$4 sm:$0xff]  }
 0x131   : > { %1716 = vmatprep.subr.bf16.mxu0 %v2794_v43  ;;  %1802 = vmatprep.subr.bf16.mxu1 %v2797_v44  ;;  %v2854_v43 = vld [vmem:[%s3718_s4 + $0x3a4] ss:$16 sps:$4 sm:$0xff]   ;;  %v2857_v44 = vld [vmem:[%s3718_s4 + $0x3ac] ss:$16 sps:$4 sm:$0xff]  }
 0x132   : > { %v2885_v9 = vld [vmem:[%s3721_s7 + $0x98] sm:$0xff]   ;;  %v2888_v13 = vld [vmem:[%s3721_s7 + $0x20] sm:$0xff]  }
 0x134   : > { %1717 = vmatpush1.bf16.msra.mxu0 %v2792_v47  ;;  %1803 = vmatpush1.bf16.msra.mxu1 %v2795_v48  ;;  %v2860_v47 = vld [vmem:[%s3718_s4 + $0x3c4] ss:$16 sps:$4 sm:$0xff]   ;;  %v2863_v48 = vld [vmem:[%s3718_s4 + $0x3cc] ss:$16 sps:$4 sm:$0xff]  }
 0x135   : > { %1718 = vmatprep.subr.bf16.mxu0 %v2800_v51  ;;  %1804 = vmatprep.subr.bf16.mxu1 %v2803_v52  ;;  %v2866_v51 = vld [vmem:[%s3718_s4 + $0x3e4] ss:$16 sps:$4 sm:$0xff]   ;;  %v2869_v52 = vld [vmem:[%s3718_s4 + $0x3ec] ss:$16 sps:$4 sm:$0xff]  }
 0x138   : > { %1719 = vmatpush1.bf16.msra.mxu0 %v2798_v60  ;;  %1805 = vmatpush1.bf16.msra.mxu1 %v2801_v61  ;;  %v2875_v60 = vld [vmem:[%s3721_s7 + $0xc8] sm:$0xff]  }
 0x139   : > { %1720 = vmatprep.subr.bf16.mxu0 %v2806_v0  ;;  %1806 = vmatprep.subr.bf16.mxu1 %v2809_v1  ;;  %v2876_v61 = vld [vmem:[%s3721_s7 + $0x8] sm:$0xff]   ;;  %v2879_v0 = vld [vmem:[%s3721_s7 + $0xd0] sm:$0xff]  }
 0x13a   : > { %v2880_v1 = vld [vmem:[%s3721_s7 + $0x10] sm:$0xff]  }
 0x13c   : > { %1721 = vmatpush1.bf16.msra.mxu0 %v2804_v10  ;;  %1807 = vmatpush1.bf16.msra.mxu1 %v2807_v11  ;;  %v2886_v10 = vld [vmem:[%s3721_s7 + $0x60] sm:$0xff]  }
 0x13d   : > { %1722 = vmatprep.subr.bf16.mxu0 %v2812_v12  ;;  %1808 = vmatprep.subr.bf16.mxu1 %v2815_v14  ;;  %v2887_v11 = vld [vmem:[%s3721_s7 + $0xe0] sm:$0xff]   ;;  %v2890_v14 = vld [vmem:[%s3721_s7 + $0x68] sm:$0xff]  }
 0x13e   : > { %v2889_v12 = vld [vmem:[%s3721_s7 + $0xa0] sm:$0xff]  }
 0x140   : > { %1723 = vmatpush1.bf16.msra.mxu0 %v2810_v15  ;;  %1809 = vmatpush1.bf16.msra.mxu1 %v2813_v16  ;;  %v2891_v15 = vld [vmem:[%s3721_s7 + $0xe8] sm:$0xff]  }
 0x141   : > { %1724 = vmatprep.subr.bf16.mxu0 %v2818_v17  ;;  %1810 = vmatprep.subr.bf16.mxu1 %v2821_v18  ;;  %v2892_v16 = vld [vmem:[%s3721_s7 + $0x28] sm:$0xff]   ;;  %v2894_v18 = vld [vmem:[%s3721_s7 + $0x70] sm:$0xff]  }
 0x142   : > { %v2893_v17 = vld [vmem:[%s3721_s7 + $0xa8] sm:$0xff]  }
 0x144   : > { %1725 = vmatpush1.bf16.msra.mxu0 %v2816_v19  ;;  %1811 = vmatpush1.bf16.msra.mxu1 %v2819_v20  ;;  %v2895_v19 = vld [vmem:[%s3721_s7 + $0xf0] sm:$0xff]  }
 0x145   : > { %1726 = vmatprep.subr.bf16.mxu0 %v2824_v21  ;;  %1812 = vmatprep.subr.bf16.mxu1 %v2827_v22  ;;  %v2896_v20 = vld [vmem:[%s3721_s7 + $0x30] sm:$0xff]   ;;  %v2898_v22 = vld [vmem:[%s3721_s7 + $0x78] sm:$0xff]  }
 0x146   : > { %v2897_v21 = vld [vmem:[%s3721_s7 + $0xb0] sm:$0xff]  }
 0x148   : > { %1727 = vmatpush1.bf16.msra.mxu0 %v2822_v23  ;;  %1813 = vmatpush1.bf16.msra.mxu1 %v2825_v24  ;;  %v2899_v23 = vld [vmem:[%s3721_s7 + $0xf8] sm:$0xff]  }
 0x149   : > { %1728 = vmatprep.subr.bf16.mxu0 %v2830_v25  ;;  %1814 = vmatprep.subr.bf16.mxu1 %v2833_v26  ;;  %v2900_v24 = vld [vmem:[%s3721_s7 + $0x38] sm:$0xff]   ;;  %v1005_v26 = vld [vmem:[%s3719_s5] sm:$0xf] }
 0x14a   : > { %v2901_v25 = vld [vmem:[%s3721_s7 + $0xb8] sm:$0xff]  }
 0x14c   : > { %1729 = vmatpush1.bf16.msra.mxu0 %v2828_v27  ;;  %1815 = vmatpush1.bf16.msra.mxu1 %v2831_v28  ;;  %v1010_v27 = vrot.slane %v1005_v26, %v414_v6  ;;  %v1018_v28 = vrot.slane %v1005_v26, %v422_v36 }
 0x14d   : > { %1730 = vmatprep.subr.bf16.mxu0 %v2836_v29  ;;  %1816 = vmatprep.subr.bf16.mxu1 %v2839_v30  ;;  %v1014_v29 = vrot.slane %v1005_v26, %v418_v8  ;;  %v1022_v30 = vrot.slane %v1005_v26, %v426_v39 }
 0x150   : > { %1731 = vmatpush1.bf16.msra.mxu0 %v2834_v31  ;;  %1817 = vmatpush1.bf16.msra.mxu1 %v2837_v32  ;;  %v1847_v32 = vstv %s343_s11 }
 0x151   : > { %1732 = vmatprep.subr.bf16.mxu0 %v2842_v33  ;;  %1818 = vmatprep.subr.bf16.mxu1 %v2845_v34 }
 0x154   : > { %1733 = vmatpush1.bf16.msra.mxu0 %v2840_v35  ;;  %1819 = vmatpush1.bf16.msra.mxu1 %v2843_v37 }
 0x155   : > { %1734 = vmatprep.subr.bf16.mxu0 %v2848_v38  ;;  %1820 = vmatprep.subr.bf16.mxu1 %v2851_v40 }
 0x158   : > { %1735 = vmatpush1.bf16.msra.mxu0 %v2846_v41  ;;  %1821 = vmatpush1.bf16.msra.mxu1 %v2849_v42 }
 0x159   : > { %1736 = vmatprep.subr.bf16.mxu0 %v2854_v43  ;;  %1822 = vmatprep.subr.bf16.mxu1 %v2857_v44 }
 0x15c   : > { %1737 = vmatpush1.bf16.msra.mxu0 %v2852_v45  ;;  %1823 = vmatpush1.bf16.msra.mxu1 %v2855_v46 }
 0x15d   : > { %1738 = vmatprep.subr.bf16.mxu0 %v2860_v47  ;;  %1824 = vmatprep.subr.bf16.mxu1 %v2863_v48 }
 0x160   : > { %1739 = vmatpush1.bf16.msra.mxu0 %v2858_v49  ;;  %1825 = vmatpush1.bf16.msra.mxu1 %v2861_v50 }
 0x161   : > { %1740 = vmatprep.subr.bf16.mxu0 %v2866_v51  ;;  %1826 = vmatprep.subr.bf16.mxu1 %v2869_v52 }
 0x164   : > { %1741 = vmatpush1.bf16.msra.mxu0 %v2864_v53  ;;  %1827 = vmatpush1.bf16.msra.mxu1 %v2867_v54 }
 0x165   : > { %2511 = vmatprep.subr.bf16.mxu0 %v2870_v55  ;;  %2533 = vmatprep.subr.bf16.mxu1 %v2871_v56 }
 0x167   : > { %1743 = vmatmul.mubr.bf16.vlgmr.msra.gmra.mrb[4].mxu0 %v3464_v7  ;;  %1829 = vmatmul.mubr.bf16.vlgmr.msra.gmra.mrb[4].mxu1 %v3464_v7  ;;  %v2884_v7 = vld [vmem:[%s3721_s7 + $0x18] sm:$0xff]  }
 0x168   : > { %2512 = vmatpush3.bf16.msra.mxu0 %v2872_v57  ;;  %2534 = vmatpush3.bf16.msra.mxu1 %v2873_v58 }
 0x169   : > { %2513 = vmatprep.subr.bf16.mxu0 %v2874_v59  ;;  %2535 = vmatprep.subr.bf16.mxu1 %v2875_v60 }
 0x16c   : > { %2514 = vmatpush3.bf16.msra.mxu0 %v2876_v61  ;;  %2536 = vmatpush3.bf16.msra.mxu1 %v2877_v62 }
 0x16d   : > { %2515 = vmatprep.subr.bf16.mxu0 %v2878_v63  ;;  %2537 = vmatprep.subr.bf16.mxu1 %v2879_v0 }
 0x170   : > { %2516 = vmatpush3.bf16.msra.mxu0 %v2880_v1  ;;  %2538 = vmatpush3.bf16.msra.mxu1 %v2881_v2 }
 0x171   : > { %2517 = vmatprep.subr.bf16.mxu0 %v2882_v3  ;;  %2539 = vmatprep.subr.bf16.mxu1 %v2883_v4  ;;  %v2475_v3 = vld [vmem:[%s3722_s8] ss:$0 sm:$0xff] }
 0x174   : > { %2518 = vmatpush3.bf16.msra.mxu0 %v2884_v7  ;;  %2540 = vmatpush3.bf16.msra.mxu1 %v2885_v9 }
 0x175   : > { %2519 = vmatprep.subr.bf16.mxu0 %v2886_v10  ;;  %2541 = vmatprep.subr.bf16.mxu1 %v2887_v11 }
 0x178   : > { %2520 = vmatpush3.bf16.msra.mxu0 %v2888_v13  ;;  %2542 = vmatpush3.bf16.msra.mxu1 %v2889_v12 }
 0x179   : > { %2521 = vmatprep.subr.bf16.mxu0 %v2890_v14  ;;  %2543 = vmatprep.subr.bf16.mxu1 %v2891_v15 }
 0x17c   : > { %2522 = vmatpush3.bf16.msra.mxu0 %v2892_v16  ;;  %2544 = vmatpush3.bf16.msra.mxu1 %v2893_v17 }
 0x17d   : > { %2523 = vmatprep.subr.bf16.mxu0 %v2894_v18  ;;  %2545 = vmatprep.subr.bf16.mxu1 %v2895_v19 }
 0x180   : > { %2524 = vmatpush3.bf16.msra.mxu0 %v2896_v20  ;;  %2546 = vmatpush3.bf16.msra.mxu1 %v2897_v21 }
 0x181   : > { %2525 = vmatprep.subr.bf16.mxu0 %v2898_v22  ;;  %2547 = vmatprep.subr.bf16.mxu1 %v2899_v23 }
 0x184   : > { %2526 = vmatpush3.bf16.msra.mxu0 %v2900_v24  ;;  %2548 = vmatpush3.bf16.msra.mxu1 %v2901_v25 }
 0x23a   : > { %v1744_v31 = vpop.f32.mrb[4].mxu0  ;;  %v1830_v33 = vpop.f32.mrb[4].mxu1 }
 0x23b   : > { %v2555_v34 = vadd.f32 %v1744_v31, %v1010_v27  ;;  %v2559_v35 = vadd.f32 %v1830_v33, %v1018_v28  ;;  %v1746_v37 = vpop.f32.mrb[5].mxu0  ;;  %v1832_v38 = vpop.f32.mrb[5].mxu1 }
 0x23c   : > { %v2556_v40 = vadd.f32 %v1746_v37, %v1014_v29  ;;  %v2560_v41 = vadd.f32 %v1832_v38, %v1022_v30  ;;  %v1748_v42 = vpop.f32.mrb[6].mxu0  ;;  %v1834_v6 = vpop.f32.mrb[6].mxu1 }
 0x23d   : > { %vm1839_vm8 = vcmp.gt.f32.partialorder %v2555_v34, 0.0  ;;  %v1848_v43 = vmul.f32 %v2555_v34, %v1847_v32  ;;  %vm1841_vm9 = vcmp.gt.f32.partialorder %v2559_v35, 0.0  ;;  %v1850_v36 = vmul.f32 %v2559_v35, %v1847_v32  ;;  %v1750_v44 = vpop.f32.mrb[7].mxu0  ;;  %v1836_v8 = vpop.f32.mrb[7].mxu1 }
 0x23e   : > { %vm1840_vm10 = vcmp.gt.f32.partialorder %v2556_v40, 0.0  ;;  %v1849_v5 = vmul.f32 %v2556_v40, %v1847_v32  ;;  %vm1842_vm11 = vcmp.gt.f32.partialorder %v2560_v41, 0.0  ;;  %v1851_v39 = vmul.f32 %v2560_v41, %v1847_v32 }
 0x23f   : > { %v2557_v45 = vadd.f32 %v1748_v42, %v1010_v27  ;;  %v2561_v46 = vadd.f32 %v1834_v6, %v1018_v28  ;;  %v1856_v47 = vsel %vm1839_vm8, %v2555_v34, %v1848_v43  ;;  %v1858_v48 = vsel %vm1841_vm9, %v2559_v35, %v1850_v36 }
 0x240   : > { %v2558_v49 = vadd.f32 %v1750_v44, %v1014_v29  ;;  %v2562_v50 = vadd.f32 %v1836_v8, %v1022_v30  ;;  %v1857_v57 = vsel %vm1840_vm10, %v2556_v40, %v1849_v5  ;;  %v1859_v58 = vsel %vm1842_vm11, %v2560_v41, %v1851_v39 }
 0x241   : > { %vm1843_vm12 = vcmp.gt.f32.partialorder %v2557_v45, 0.0  ;;  %v1852_v51 = vmul.f32 %v2557_v45, %v1847_v32  ;;  %vm1845_vm13 = vcmp.gt.f32.partialorder %v2561_v46, 0.0  ;;  %v1854_v52 = vmul.f32 %v2561_v46, %v1847_v32 }
 0x242   : > { %vm1844_vm14 = vcmp.gt.f32.partialorder %v2558_v49, 0.0  ;;  %v1853_v53 = vmul.f32 %v2558_v49, %v1847_v32  ;;  %vm1846_vm15 = vcmp.gt.f32.partialorder %v2562_v50, 0.0  ;;  %v1855_v54 = vmul.f32 %v2562_v50, %v1847_v32 }
 0x243   : > { %v1860_v55 = vsel %vm1843_vm12, %v2557_v45, %v1852_v51  ;;  %v1862_v56 = vsel %vm1845_vm13, %v2561_v46, %v1854_v52 }
 0x244   : > { %v1864_v59 = vpack.c.bf16 %v1860_v55, %v1856_v47  ;;  %v1866_v60 = vpack.c.bf16 %v1862_v56, %v1858_v48  ;;  %v1861_v61 = vsel %vm1844_vm14, %v2558_v49, %v1853_v53  ;;  %v1863_v62 = vsel %vm1846_vm15, %v2562_v50, %v1855_v54 }
 0x245   : > { %v1865_v63 = vpack.c.bf16 %v1861_v61, %v1857_v57  ;;  %v1867_v0 = vpack.c.bf16 %v1863_v62, %v1859_v58 }
 0x247   : > { %2163 = vmatprep.mubr.bf16.mxu0 %v1865_v63  ;;  %2204 = vmatprep.mubr.bf16.mxu1 %v1867_v0 }
 0x248   : > { %2164 = vmatmul.mubr.bf16.vlgmr.msra.gmra.mrb[8].mxu0 %v1864_v59  ;;  %2205 = vmatmul.mubr.bf16.vlgmr.msra.gmra.mrb[8].mxu1 %v1866_v60 }
 0x31b   : > { %v2527_v1 = vpop.f32.mrb[8].mxu0  ;;  %v2549_v2 = vpop.f32.mrb[8].mxu1 }
 0x31c   : > { %v2528_v4 = vpop.f32.mrb[9].mxu0  ;;  %v2550_v7 = vpop.f32.mrb[9].mxu1 }
 0x31d   : > { %v2529_v9 = vadd.f32 %v2528_v4, %v2527_v1  ;;  %v2551_v10 = vadd.f32 %v2550_v7, %v2549_v2  ;;  %v2530_v11 = vpop.f32.mrb[10].mxu0  ;;  %v2552_v13 = vpop.f32.mrb[10].mxu1 }
 0x31e   : > { %v2531_v12 = vpop.f32.mrb[11].mxu0  ;;  %v2553_v14 = vpop.f32.mrb[11].mxu1 }
 0x31f   : > { %v2166_v15 = vadd.f32 %v2529_v9, %v2475_v3  ;;  %v2532_v16 = vadd.f32 %v2531_v12, %v2530_v11  ;;  %v2554_v17 = vadd.f32 %v2553_v14, %v2552_v13 }
 0x321   : > { %v2207_v18 = vadd.f32 %v2551_v10, %v2166_v15  ;;  %v2169_v19 = vadd.f32 %v2532_v16, %v2475_v3 }
 0x323   : > { %2213 = vst [vmem:[%s339_s18] sm:$0xff] %v2207_v18  ;;  %v2210_v20 = vadd.f32 %v2554_v17, %v2169_v19 }
 0x325   : > { %2214 = vst [vmem:[%s339_s18 + $0x8] sm:$0xff] %v2210_v20 }
 0x326 PF: > { %s21_s13 = sadd.s32 1, %s2908_s13  }
 0x327   : > { %p18_p4 = scmp.ge.s32.totalorder %s21_s13, 5  }
 0x329   :  { %20 = sbr.rel (!%p18_p4) target bundleno = 3 (0x3), region = 86 }

</bundles_post_ra>
